<compile_context>
chip_gen: v6e
topology: v6e:2x2x1
jax: 0.10.0
libtpu: 0.0.40
codegen_flags: <defaults>
</compile_context>

<pallas_src>
import jax
import jax.numpy as jnp
from jax.experimental import pallas as pl
from jax.experimental.pallas import tpu as pltpu

_LANES = 128
_MIN_PALLAS_BYTES = 64 * 1024        # below this, fused XLA elementwise is strictly cheaper
_SPLIT_BYTES = 2 * 1024 * 1024       # above this, force >= num_cores blocks on multi-TC chips


def _tpu_generation_limits():
    """Returns (max_block_bytes, vmem_limit_bytes, tensorcores_per_chip)."""
    try:
        kind = jax.devices()[0].device_kind.lower()
    except Exception:
        kind = ""
    if "v7" in kind:
        # v7x: 64 MiB VMEM per TensorCore, 2 TCs/chip. ~8 MiB block -> ~32 MiB
        # with in+out double buffering, safely under the 48 MiB limit we set.
        return 8 * 1024 * 1024, 48 * 1024 * 1024, 2
    # v5e / v6e (and default): 128 MiB VMEM, single TensorCore.
    return 16 * 1024 * 1024, 72 * 1024 * 1024, 1


def _double_kernel(x_ref, o_ref):
    # Load the tile once; elementwise double on the (row_tile, 128) block.
    v = x_ref[...]
    o_ref[...] = v + v


def _pick_row_tile(rows: int, max_rows: int, sub: int, min_blocks: int) -> int:
    """Largest row tile that fits the per-block budget, yields at least
    `min_blocks` blocks, and ideally divides `rows` evenly while being a
    multiple of the dtype's native sublane count `sub`."""
    cap = min(max_rows, rows)
    if min_blocks > 1:
        cap = min(cap, max(1, rows // min_blocks))
    if cap >= rows:
        return rows  # single full-extent block (trivially satisfies (8,128) rule)

    # Largest divisor of `rows` that is <= cap and a multiple of `sub`
    # -> every grid step identical, no masked trailing block.
    best = 0
    i = 1
    while i * i <= rows:
        if rows % i == 0:
            for cand in (i, rows // i):
                if cand <= cap and cand % sub == 0 and cand > best:
                    best = cand
        i += 1
    if best:
        return best

    # Fallback: sublane-aligned tile with a ragged (Pallas-masked) last block.
    tile = cap - (cap % sub)
    if tile <= 0:
        tile = min(sub, rows)
    return tile


def simple_unsqueeze_forward(x: jax.Array, dimension: int) -> jax.Array:
    """Equivalent of SimpleUnsqueezeModel(dimension).forward(x); the inplace
    and non-inplace PyTorch variants produce identical values/shapes."""
    orig_shape = x.shape
    size = int(x.size)
    itemsize = jnp.dtype(x.dtype).itemsize
    total_bytes = size * itemsize

    # Degenerate / tiny / ragged (not a multiple of 128) cases: plain XLA is
    # already at roofline and avoids sub-128-lane masked stores.
    if size == 0 or total_bytes < _MIN_PALLAS_BYTES or size % _LANES != 0:
        return jnp.expand_dims(x + x, dimension)

    max_block_bytes, vmem_limit, num_cores = _tpu_generation_limits()

    # Lane-dense slab: flatten to (rows, 128) so every store is a full vst.
    rows = size // _LANES
    x2d = x.reshape(rows, _LANES)

    # Native sublane tile: 8 rows for 4-byte, 16 for 2-byte, 32 for 1-byte dtypes.
    sub = max(8, 32 // itemsize)
    max_rows = max(sub, max_block_bytes // (_LANES * itemsize))
    min_blocks = num_cores if (num_cores > 1 and total_bytes > _SPLIT_BYTES) else 1

    row_tile = _pick_row_tile(rows, max_rows, sub, min_blocks)
    grid = (pl.cdiv(rows, row_tile),)

    doubled = pl.pallas_call(
        _double_kernel,
        out_shape=jax.ShapeDtypeStruct((rows, _LANES), x.dtype),
        grid=grid,
        in_specs=[pl.BlockSpec((row_tile, _LANES), lambda i: (i, 0))],
        out_specs=pl.BlockSpec((row_tile, _LANES), lambda i: (i, 0)),
        input_output_aliases={0: 0},
        cost_estimate=pl.CostEstimate(
            flops=size,
            transcendentals=0,
            bytes_accessed=2 * total_bytes,
        ),
        compiler_params=pltpu.CompilerParams(
            dimension_semantics=("parallel",),
            vmem_limit_bytes=vmem_limit,
        ),
    )(x2d)

    # Restore original shape, then unsqueeze (pure metadata, like torch.unsqueeze).
    y = doubled.reshape(orig_shape)
    return jnp.expand_dims(y, dimension)


if __name__ == "__main__":
    key = jax.random.PRNGKey(0)
    k1, k2 = jax.random.split(key)

    # 1) Test-harness-sized input (2, 4, 16, 16): tiny -> XLA fast path.
    x_small = jax.random.normal(k1, (2, 4, 16, 16), dtype=jnp.float32)
    dim_small = 1  # SimpleUnsqueezeModel(dimension=1)
    out_small = jax.block_until_ready(simple_unsqueeze_forward(x_small, dim_small))
    ref_small = jnp.expand_dims(x_small + x_small, dim_small)
    assert out_small.shape == (2, 1, 4, 16, 16), out_small.shape
    assert out_small.dtype == x_small.dtype
    assert jnp.allclose(out_small, ref_small), "small-input mismatch vs reference"

    # 2) Larger input that exercises the lane-dense Pallas streaming kernel.
    x_big = jax.random.normal(k2, (16, 64, 256), dtype=jnp.float32)  # 1 MiB
    dim_big = 0
    fwd = jax.jit(simple_unsqueeze_forward, static_argnums=1)
    out_big = jax.block_until_ready(fwd(x_big, dim_big))
    ref_big = jnp.expand_dims(x_big + x_big, dim_big)
    assert out_big.shape == (1, 16, 64, 256), out_big.shape
    assert out_big.dtype == x_big.dtype
    assert jnp.allclose(out_big, ref_big), "large-input mismatch vs reference"

    print("KERNEL_OK")
</pallas_src>

<mosaic_0001>
module attributes {stable_mosaic.version = 11 : i64} {
  func.func @_double_kernel(%arg0: i32, %arg1: memref<2048x128xf32, #tpu.memory_space<vmem>>, %arg2: memref<2048x128xf32, #tpu.memory_space<vmem>>) attributes {dimension_semantics = [#tpu.dimension_semantics<parallel>], iteration_bounds = array<i64: 1>, scalar_prefetch = 0 : i64, scratch_operands = 0 : i64, tpu.core_type = #tpu.core_type<tc>, window_params = [{transform_indices = @transform_0, window_bounds = array<i64: 2048, 128>}, {transform_indices = @transform_1, window_bounds = array<i64: 2048, 128>}]} {
    %c0 = arith.constant 0 : index
    %c0_0 = arith.constant 0 : index
    %0 = vector.load %arg1[%c0, %c0_0] : memref<2048x128xf32, #tpu.memory_space<vmem>>, vector<2048x128xf32>
    %1 = arith.addf %0, %0 : vector<2048x128xf32>
    %c0_1 = arith.constant 0 : index
    %c0_2 = arith.constant 0 : index
    %2 = vector.load %arg2[%c0_1, %c0_2] : memref<2048x128xf32, #tpu.memory_space<vmem>>, vector<2048x128xf32>
    tpu.vector_store %arg2[%c0_1, %c0_2], %1 {strides = array<i32>} : memref<2048x128xf32, #tpu.memory_space<vmem>>, vector<2048x128xf32>,
    return
  }
  func.func @transform_0(%arg0: i32) -> (i32, i32) {
    %c0_i32 = arith.constant 0 : i32
    %c0_i32_0 = arith.constant 0 : i32
    return %arg0, %c0_i32 : i32, i32
  }
  func.func @transform_1(%arg0: i32) -> (i32, i32) {
    %c0_i32 = arith.constant 0 : i32
    %c0_i32_0 = arith.constant 0 : i32
    return %arg0, %c0_i32 : i32, i32
  }
}

</mosaic_0001>

<bundles_post_ra>
// kernel: simple_unsqueeze_forward.1
= control target key start
LH: loop header
LB: loop body
LE: loop exit
PB: predicated region body
PF: predicated region fallthrough
CT: control target
= control target key end

     0   :  { %s2326_s0 = inlined_call_operand.vmem [shape: f32[2048,128], index: 0, kind: input, shape index: {}, may-alias: {0,1}]   ;;  %s2327_s1 = inlined_call_operand.vmem [shape: f32[2048,128], index: 1, kind: output, shape index: {}, may-alias: {0,1}]  }
   0x1   :  { %v8_v0 = vld [vmem:[%s2326_s0] sm:$0xff]  ;;  %v9_v1 = vld [vmem:[%s2326_s0 + $0x8] sm:$0xff]  ;;  %v10_v2 = vld [vmem:[%s2326_s0 + $0x10] sm:$0xff] }
   0x2   :  { %v264_v3 = vadd.f32 %v8_v0, %v8_v0  ;;  %v265_v4 = vadd.f32 %v9_v1, %v9_v1  ;;  %v266_v5 = vadd.f32 %v10_v2, %v10_v2  ;;  %v11_v6 = vld [vmem:[%s2326_s0 + $0x18] sm:$0xff]  ;;  %v12_v7 = vld [vmem:[%s2326_s0 + $0x20] sm:$0xff]  ;;  %v13_v8 = vld [vmem:[%s2326_s0 + $0x28] sm:$0xff] }
   0x3   :  { %v267_v9 = vadd.f32 %v11_v6, %v11_v6  ;;  %v268_v10 = vadd.f32 %v12_v7, %v12_v7  ;;  %v269_v11 = vadd.f32 %v13_v8, %v13_v8  ;;  %v14_v12 = vld [vmem:[%s2326_s0 + $0x30] sm:$0xff]  ;;  %v15_v13 = vld [vmem:[%s2326_s0 + $0x38] sm:$0xff]  ;;  %v16_v14 = vld [vmem:[%s2326_s0 + $0x40] sm:$0xff] }
   0x4   :  { %520 = vst [vmem:[%s2327_s1] sm:$0xff] %v264_v3  ;;  %521 = vst [vmem:[%s2327_s1 + $0x8] sm:$0xff] %v265_v4  ;;  %v270_v15 = vadd.f32 %v14_v12, %v14_v12  ;;  %v271_v16 = vadd.f32 %v15_v13, %v15_v13  ;;  %v272_v17 = vadd.f32 %v16_v14, %v16_v14 }
   0x5   :  { %522 = vst [vmem:[%s2327_s1 + $0x10] sm:$0xff] %v266_v5 }
   0xc   :  { %v17_v18 = vld [vmem:[%s2326_s0 + $0x48] sm:$0xff]  ;;  %v18_v19 = vld [vmem:[%s2326_s0 + $0x50] sm:$0xff]  ;;  %v19_v20 = vld [vmem:[%s2326_s0 + $0x58] sm:$0xff] }
   0xd   :  { %523 = vst [vmem:[%s2327_s1 + $0x18] sm:$0xff] %v267_v9  ;;  %524 = vst [vmem:[%s2327_s1 + $0x20] sm:$0xff] %v268_v10  ;;  %v273_v21 = vadd.f32 %v17_v18, %v17_v18  ;;  %v274_v22 = vadd.f32 %v18_v19, %v18_v19  ;;  %v275_v23 = vadd.f32 %v19_v20, %v19_v20 }
   0xe   :  { %525 = vst [vmem:[%s2327_s1 + $0x28] sm:$0xff] %v269_v11 }
  0x15   :  { %v20_v24 = vld [vmem:[%s2326_s0 + $0x60] sm:$0xff]  ;;  %v21_v25 = vld [vmem:[%s2326_s0 + $0x68] sm:$0xff]  ;;  %v22_v26 = vld [vmem:[%s2326_s0 + $0x70] sm:$0xff] }
  0x16   :  { %526 = vst [vmem:[%s2327_s1 + $0x30] sm:$0xff] %v270_v15  ;;  %527 = vst [vmem:[%s2327_s1 + $0x38] sm:$0xff] %v271_v16  ;;  %v276_v27 = vadd.f32 %v20_v24, %v20_v24  ;;  %v277_v28 = vadd.f32 %v21_v25, %v21_v25  ;;  %v278_v29 = vadd.f32 %v22_v26, %v22_v26 }
  0x17   :  { %528 = vst [vmem:[%s2327_s1 + $0x40] sm:$0xff] %v272_v17 }
  0x1e   :  { %v23_v30 = vld [vmem:[%s2326_s0 + $0x78] sm:$0xff]  ;;  %v24_v31 = vld [vmem:[%s2326_s0 + $0x80] sm:$0xff]  ;;  %v25_v32 = vld [vmem:[%s2326_s0 + $0x88] sm:$0xff] }
  0x1f   :  { %529 = vst [vmem:[%s2327_s1 + $0x48] sm:$0xff] %v273_v21  ;;  %530 = vst [vmem:[%s2327_s1 + $0x50] sm:$0xff] %v274_v22  ;;  %v279_v33 = vadd.f32 %v23_v30, %v23_v30  ;;  %v280_v34 = vadd.f32 %v24_v31, %v24_v31  ;;  %v281_v35 = vadd.f32 %v25_v32, %v25_v32 }
  0x20   :  { %531 = vst [vmem:[%s2327_s1 + $0x58] sm:$0xff] %v275_v23 }
  0x27   :  { %v26_v36 = vld [vmem:[%s2326_s0 + $0x90] sm:$0xff]  ;;  %v27_v37 = vld [vmem:[%s2326_s0 + $0x98] sm:$0xff]  ;;  %v28_v38 = vld [vmem:[%s2326_s0 + $0xa0] sm:$0xff] }
  0x28   :  { %532 = vst [vmem:[%s2327_s1 + $0x60] sm:$0xff] %v276_v27  ;;  %533 = vst [vmem:[%s2327_s1 + $0x68] sm:$0xff] %v277_v28  ;;  %v282_v39 = vadd.f32 %v26_v36, %v26_v36  ;;  %v283_v40 = vadd.f32 %v27_v37, %v27_v37  ;;  %v284_v41 = vadd.f32 %v28_v38, %v28_v38 }
  0x29   :  { %534 = vst [vmem:[%s2327_s1 + $0x70] sm:$0xff] %v278_v29 }
  0x30   :  { %v29_v42 = vld [vmem:[%s2326_s0 + $0xa8] sm:$0xff]  ;;  %v30_v43 = vld [vmem:[%s2326_s0 + $0xb0] sm:$0xff]  ;;  %v31_v44 = vld [vmem:[%s2326_s0 + $0xb8] sm:$0xff] }
  0x31   :  { %535 = vst [vmem:[%s2327_s1 + $0x78] sm:$0xff] %v279_v33  ;;  %536 = vst [vmem:[%s2327_s1 + $0x80] sm:$0xff] %v280_v34  ;;  %v285_v45 = vadd.f32 %v29_v42, %v29_v42  ;;  %v286_v46 = vadd.f32 %v30_v43, %v30_v43  ;;  %v287_v47 = vadd.f32 %v31_v44, %v31_v44 }
  0x32   :  { %537 = vst [vmem:[%s2327_s1 + $0x88] sm:$0xff] %v281_v35 }
  0x39   :  { %v32_v48 = vld [vmem:[%s2326_s0 + $0xc0] sm:$0xff]  ;;  %v33_v49 = vld [vmem:[%s2326_s0 + $0xc8] sm:$0xff]  ;;  %v34_v50 = vld [vmem:[%s2326_s0 + $0xd0] sm:$0xff] }
  0x3a   :  { %538 = vst [vmem:[%s2327_s1 + $0x90] sm:$0xff] %v282_v39  ;;  %539 = vst [vmem:[%s2327_s1 + $0x98] sm:$0xff] %v283_v40  ;;  %v288_v51 = vadd.f32 %v32_v48, %v32_v48  ;;  %v289_v52 = vadd.f32 %v33_v49, %v33_v49  ;;  %v290_v53 = vadd.f32 %v34_v50, %v34_v50 }
  0x3b   :  { %540 = vst [vmem:[%s2327_s1 + $0xa0] sm:$0xff] %v284_v41 }
  0x42   :  { %v35_v54 = vld [vmem:[%s2326_s0 + $0xd8] sm:$0xff]  ;;  %v36_v55 = vld [vmem:[%s2326_s0 + $0xe0] sm:$0xff]  ;;  %v37_v56 = vld [vmem:[%s2326_s0 + $0xe8] sm:$0xff] }
  0x43   :  { %541 = vst [vmem:[%s2327_s1 + $0xa8] sm:$0xff] %v285_v45  ;;  %542 = vst [vmem:[%s2327_s1 + $0xb0] sm:$0xff] %v286_v46  ;;  %v291_v57 = vadd.f32 %v35_v54, %v35_v54  ;;  %v292_v58 = vadd.f32 %v36_v55, %v36_v55  ;;  %v293_v59 = vadd.f32 %v37_v56, %v37_v56 }
  0x44   :  { %543 = vst [vmem:[%s2327_s1 + $0xb8] sm:$0xff] %v287_v47 }
  0x4b   :  { %v38_v60 = vld [vmem:[%s2326_s0 + $0xf0] sm:$0xff]  ;;  %v39_v61 = vld [vmem:[%s2326_s0 + $0xf8] sm:$0xff]  ;;  %v40_v62 = vld [vmem:[%s2326_s0 + $0x100] sm:$0xff] }
  0x4c   :  { %544 = vst [vmem:[%s2327_s1 + $0xc0] sm:$0xff] %v288_v51  ;;  %545 = vst [vmem:[%s2327_s1 + $0xc8] sm:$0xff] %v289_v52  ;;  %v294_v63 = vadd.f32 %v38_v60, %v38_v60  ;;  %v295_v0 = vadd.f32 %v39_v61, %v39_v61  ;;  %v296_v1 = vadd.f32 %v40_v62, %v40_v62 }
  0x4d   :  { %546 = vst [vmem:[%s2327_s1 + $0xd0] sm:$0xff] %v290_v53 }
  0x54   :  { %v41_v2 = vld [vmem:[%s2326_s0 + $0x108] sm:$0xff]  ;;  %v42_v3 = vld [vmem:[%s2326_s0 + $0x110] sm:$0xff]  ;;  %v43_v4 = vld [vmem:[%s2326_s0 + $0x118] sm:$0xff] }
  0x55   :  { %547 = vst [vmem:[%s2327_s1 + $0xd8] sm:$0xff] %v291_v57  ;;  %548 = vst [vmem:[%s2327_s1 + $0xe0] sm:$0xff] %v292_v58  ;;  %v297_v5 = vadd.f32 %v41_v2, %v41_v2  ;;  %v298_v6 = vadd.f32 %v42_v3, %v42_v3  ;;  %v299_v7 = vadd.f32 %v43_v4, %v43_v4 }
  0x56   :  { %549 = vst [vmem:[%s2327_s1 + $0xe8] sm:$0xff] %v293_v59 }
  0x5d   :  { %v44_v8 = vld [vmem:[%s2326_s0 + $0x120] sm:$0xff]  ;;  %v45_v9 = vld [vmem:[%s2326_s0 + $0x128] sm:$0xff]  ;;  %v46_v10 = vld [vmem:[%s2326_s0 + $0x130] sm:$0xff] }
  0x5e   :  { %550 = vst [vmem:[%s2327_s1 + $0xf0] sm:$0xff] %v294_v63  ;;  %551 = vst [vmem:[%s2327_s1 + $0xf8] sm:$0xff] %v295_v0  ;;  %v300_v11 = vadd.f32 %v44_v8, %v44_v8  ;;  %v301_v12 = vadd.f32 %v45_v9, %v45_v9  ;;  %v302_v13 = vadd.f32 %v46_v10, %v46_v10 }
  0x5f   :  { %552 = vst [vmem:[%s2327_s1 + $0x100] sm:$0xff] %v296_v1 }
  0x66   :  { %v47_v14 = vld [vmem:[%s2326_s0 + $0x138] sm:$0xff]  ;;  %v48_v15 = vld [vmem:[%s2326_s0 + $0x140] sm:$0xff]  ;;  %v49_v16 = vld [vmem:[%s2326_s0 + $0x148] sm:$0xff] }
  0x67   :  { %553 = vst [vmem:[%s2327_s1 + $0x108] sm:$0xff] %v297_v5  ;;  %554 = vst [vmem:[%s2327_s1 + $0x110] sm:$0xff] %v298_v6  ;;  %v303_v17 = vadd.f32 %v47_v14, %v47_v14  ;;  %v304_v18 = vadd.f32 %v48_v15, %v48_v15  ;;  %v305_v19 = vadd.f32 %v49_v16, %v49_v16 }
  0x68   :  { %555 = vst [vmem:[%s2327_s1 + $0x118] sm:$0xff] %v299_v7 }
  0x6f   :  { %v50_v20 = vld [vmem:[%s2326_s0 + $0x150] sm:$0xff]  ;;  %v51_v21 = vld [vmem:[%s2326_s0 + $0x158] sm:$0xff]  ;;  %v52_v22 = vld [vmem:[%s2326_s0 + $0x160] sm:$0xff] }
  0x70   :  { %556 = vst [vmem:[%s2327_s1 + $0x120] sm:$0xff] %v300_v11  ;;  %557 = vst [vmem:[%s2327_s1 + $0x128] sm:$0xff] %v301_v12  ;;  %v306_v23 = vadd.f32 %v50_v20, %v50_v20  ;;  %v307_v24 = vadd.f32 %v51_v21, %v51_v21  ;;  %v308_v25 = vadd.f32 %v52_v22, %v52_v22 }
  0x71   :  { %558 = vst [vmem:[%s2327_s1 + $0x130] sm:$0xff] %v302_v13 }
  0x78   :  { %v53_v26 = vld [vmem:[%s2326_s0 + $0x168] sm:$0xff]  ;;  %v54_v27 = vld [vmem:[%s2326_s0 + $0x170] sm:$0xff]  ;;  %v55_v28 = vld [vmem:[%s2326_s0 + $0x178] sm:$0xff] }
  0x79   :  { %559 = vst [vmem:[%s2327_s1 + $0x138] sm:$0xff] %v303_v17  ;;  %560 = vst [vmem:[%s2327_s1 + $0x140] sm:$0xff] %v304_v18  ;;  %v309_v29 = vadd.f32 %v53_v26, %v53_v26  ;;  %v310_v30 = vadd.f32 %v54_v27, %v54_v27  ;;  %v311_v31 = vadd.f32 %v55_v28, %v55_v28 }
  0x7a   :  { %561 = vst [vmem:[%s2327_s1 + $0x148] sm:$0xff] %v305_v19 }
  0x81   :  { %v56_v32 = vld [vmem:[%s2326_s0 + $0x180] sm:$0xff]  ;;  %v57_v33 = vld [vmem:[%s2326_s0 + $0x188] sm:$0xff]  ;;  %v58_v34 = vld [vmem:[%s2326_s0 + $0x190] sm:$0xff] }
  0x82   :  { %562 = vst [vmem:[%s2327_s1 + $0x150] sm:$0xff] %v306_v23  ;;  %563 = vst [vmem:[%s2327_s1 + $0x158] sm:$0xff] %v307_v24  ;;  %v312_v35 = vadd.f32 %v56_v32, %v56_v32  ;;  %v313_v36 = vadd.f32 %v57_v33, %v57_v33  ;;  %v314_v37 = vadd.f32 %v58_v34, %v58_v34 }
  0x83   :  { %564 = vst [vmem:[%s2327_s1 + $0x160] sm:$0xff] %v308_v25 }
  0x8a   :  { %v59_v38 = vld [vmem:[%s2326_s0 + $0x198] sm:$0xff]  ;;  %v60_v39 = vld [vmem:[%s2326_s0 + $0x1a0] sm:$0xff]  ;;  %v61_v40 = vld [vmem:[%s2326_s0 + $0x1a8] sm:$0xff] }
  0x8b   :  { %565 = vst [vmem:[%s2327_s1 + $0x168] sm:$0xff] %v309_v29  ;;  %566 = vst [vmem:[%s2327_s1 + $0x170] sm:$0xff] %v310_v30  ;;  %v315_v41 = vadd.f32 %v59_v38, %v59_v38  ;;  %v316_v42 = vadd.f32 %v60_v39, %v60_v39  ;;  %v317_v43 = vadd.f32 %v61_v40, %v61_v40 }
  0x8c   :  { %567 = vst [vmem:[%s2327_s1 + $0x178] sm:$0xff] %v311_v31 }
  0x93   :  { %v62_v44 = vld [vmem:[%s2326_s0 + $0x1b0] sm:$0xff]  ;;  %v63_v45 = vld [vmem:[%s2326_s0 + $0x1b8] sm:$0xff]  ;;  %v64_v46 = vld [vmem:[%s2326_s0 + $0x1c0] sm:$0xff] }
  0x94   :  { %568 = vst [vmem:[%s2327_s1 + $0x180] sm:$0xff] %v312_v35  ;;  %569 = vst [vmem:[%s2327_s1 + $0x188] sm:$0xff] %v313_v36  ;;  %v318_v47 = vadd.f32 %v62_v44, %v62_v44  ;;  %v319_v48 = vadd.f32 %v63_v45, %v63_v45  ;;  %v320_v49 = vadd.f32 %v64_v46, %v64_v46 }
  0x95   :  { %570 = vst [vmem:[%s2327_s1 + $0x190] sm:$0xff] %v314_v37 }
  0x9c   :  { %v65_v50 = vld [vmem:[%s2326_s0 + $0x1c8] sm:$0xff]  ;;  %v66_v51 = vld [vmem:[%s2326_s0 + $0x1d0] sm:$0xff]  ;;  %v67_v52 = vld [vmem:[%s2326_s0 + $0x1d8] sm:$0xff] }
  0x9d   :  { %571 = vst [vmem:[%s2327_s1 + $0x198] sm:$0xff] %v315_v41  ;;  %572 = vst [vmem:[%s2327_s1 + $0x1a0] sm:$0xff] %v316_v42  ;;  %v321_v53 = vadd.f32 %v65_v50, %v65_v50  ;;  %v322_v54 = vadd.f32 %v66_v51, %v66_v51  ;;  %v323_v55 = vadd.f32 %v67_v52, %v67_v52 }
  0x9e   :  { %573 = vst [vmem:[%s2327_s1 + $0x1a8] sm:$0xff] %v317_v43 }
  0xa5   :  { %v68_v56 = vld [vmem:[%s2326_s0 + $0x1e0] sm:$0xff]  ;;  %v69_v57 = vld [vmem:[%s2326_s0 + $0x1e8] sm:$0xff]  ;;  %v70_v58 = vld [vmem:[%s2326_s0 + $0x1f0] sm:$0xff] }
  0xa6   :  { %574 = vst [vmem:[%s2327_s1 + $0x1b0] sm:$0xff] %v318_v47  ;;  %575 = vst [vmem:[%s2327_s1 + $0x1b8] sm:$0xff] %v319_v48  ;;  %v324_v59 = vadd.f32 %v68_v56, %v68_v56  ;;  %v325_v60 = vadd.f32 %v69_v57, %v69_v57  ;;  %v326_v61 = vadd.f32 %v70_v58, %v70_v58 }
  0xa7   :  { %576 = vst [vmem:[%s2327_s1 + $0x1c0] sm:$0xff] %v320_v49 }
  0xae   :  { %v71_v62 = vld [vmem:[%s2326_s0 + $0x1f8] sm:$0xff]  ;;  %v72_v63 = vld [vmem:[%s2326_s0 + $0x200] sm:$0xff]  ;;  %v73_v0 = vld [vmem:[%s2326_s0 + $0x208] sm:$0xff] }
  0xaf   :  { %577 = vst [vmem:[%s2327_s1 + $0x1c8] sm:$0xff] %v321_v53  ;;  %578 = vst [vmem:[%s2327_s1 + $0x1d0] sm:$0xff] %v322_v54  ;;  %v327_v1 = vadd.f32 %v71_v62, %v71_v62  ;;  %v328_v2 = vadd.f32 %v72_v63, %v72_v63  ;;  %v329_v3 = vadd.f32 %v73_v0, %v73_v0 }
  0xb0   :  { %579 = vst [vmem:[%s2327_s1 + $0x1d8] sm:$0xff] %v323_v55 }
  0xb7   :  { %v74_v4 = vld [vmem:[%s2326_s0 + $0x210] sm:$0xff]  ;;  %v75_v5 = vld [vmem:[%s2326_s0 + $0x218] sm:$0xff]  ;;  %v76_v6 = vld [vmem:[%s2326_s0 + $0x220] sm:$0xff] }
  0xb8   :  { %580 = vst [vmem:[%s2327_s1 + $0x1e0] sm:$0xff] %v324_v59  ;;  %581 = vst [vmem:[%s2327_s1 + $0x1e8] sm:$0xff] %v325_v60  ;;  %v330_v7 = vadd.f32 %v74_v4, %v74_v4  ;;  %v331_v8 = vadd.f32 %v75_v5, %v75_v5  ;;  %v332_v9 = vadd.f32 %v76_v6, %v76_v6 }
  0xb9   :  { %582 = vst [vmem:[%s2327_s1 + $0x1f0] sm:$0xff] %v326_v61 }
  0xc0   :  { %v77_v10 = vld [vmem:[%s2326_s0 + $0x228] sm:$0xff]  ;;  %v78_v11 = vld [vmem:[%s2326_s0 + $0x230] sm:$0xff]  ;;  %v79_v12 = vld [vmem:[%s2326_s0 + $0x238] sm:$0xff] }
  0xc1   :  { %583 = vst [vmem:[%s2327_s1 + $0x1f8] sm:$0xff] %v327_v1  ;;  %584 = vst [vmem:[%s2327_s1 + $0x200] sm:$0xff] %v328_v2  ;;  %v333_v13 = vadd.f32 %v77_v10, %v77_v10  ;;  %v334_v14 = vadd.f32 %v78_v11, %v78_v11  ;;  %v335_v15 = vadd.f32 %v79_v12, %v79_v12 }
  0xc2   :  { %585 = vst [vmem:[%s2327_s1 + $0x208] sm:$0xff] %v329_v3 }
  0xc9   :  { %v80_v16 = vld [vmem:[%s2326_s0 + $0x240] sm:$0xff]  ;;  %v81_v17 = vld [vmem:[%s2326_s0 + $0x248] sm:$0xff]  ;;  %v82_v18 = vld [vmem:[%s2326_s0 + $0x250] sm:$0xff] }
  0xca   :  { %586 = vst [vmem:[%s2327_s1 + $0x210] sm:$0xff] %v330_v7  ;;  %587 = vst [vmem:[%s2327_s1 + $0x218] sm:$0xff] %v331_v8  ;;  %v336_v19 = vadd.f32 %v80_v16, %v80_v16  ;;  %v337_v20 = vadd.f32 %v81_v17, %v81_v17  ;;  %v338_v21 = vadd.f32 %v82_v18, %v82_v18 }
  0xcb   :  { %588 = vst [vmem:[%s2327_s1 + $0x220] sm:$0xff] %v332_v9 }
  0xd2   :  { %v83_v22 = vld [vmem:[%s2326_s0 + $0x258] sm:$0xff]  ;;  %v84_v23 = vld [vmem:[%s2326_s0 + $0x260] sm:$0xff]  ;;  %v85_v24 = vld [vmem:[%s2326_s0 + $0x268] sm:$0xff] }
  0xd3   :  { %589 = vst [vmem:[%s2327_s1 + $0x228] sm:$0xff] %v333_v13  ;;  %590 = vst [vmem:[%s2327_s1 + $0x230] sm:$0xff] %v334_v14  ;;  %v339_v25 = vadd.f32 %v83_v22, %v83_v22  ;;  %v340_v26 = vadd.f32 %v84_v23, %v84_v23  ;;  %v341_v27 = vadd.f32 %v85_v24, %v85_v24 }
  0xd4   :  { %591 = vst [vmem:[%s2327_s1 + $0x238] sm:$0xff] %v335_v15 }
  0xdb   :  { %v86_v28 = vld [vmem:[%s2326_s0 + $0x270] sm:$0xff]  ;;  %v87_v29 = vld [vmem:[%s2326_s0 + $0x278] sm:$0xff]  ;;  %v88_v30 = vld [vmem:[%s2326_s0 + $0x280] sm:$0xff] }
  0xdc   :  { %592 = vst [vmem:[%s2327_s1 + $0x240] sm:$0xff] %v336_v19  ;;  %593 = vst [vmem:[%s2327_s1 + $0x248] sm:$0xff] %v337_v20  ;;  %v342_v31 = vadd.f32 %v86_v28, %v86_v28  ;;  %v343_v32 = vadd.f32 %v87_v29, %v87_v29  ;;  %v344_v33 = vadd.f32 %v88_v30, %v88_v30 }
  0xdd   :  { %594 = vst [vmem:[%s2327_s1 + $0x250] sm:$0xff] %v338_v21 }
  0xe4   :  { %v89_v34 = vld [vmem:[%s2326_s0 + $0x288] sm:$0xff]  ;;  %v90_v35 = vld [vmem:[%s2326_s0 + $0x290] sm:$0xff]  ;;  %v91_v36 = vld [vmem:[%s2326_s0 + $0x298] sm:$0xff] }
  0xe5   :  { %595 = vst [vmem:[%s2327_s1 + $0x258] sm:$0xff] %v339_v25  ;;  %596 = vst [vmem:[%s2327_s1 + $0x260] sm:$0xff] %v340_v26  ;;  %v345_v37 = vadd.f32 %v89_v34, %v89_v34  ;;  %v346_v38 = vadd.f32 %v90_v35, %v90_v35  ;;  %v347_v39 = vadd.f32 %v91_v36, %v91_v36 }
  0xe6   :  { %597 = vst [vmem:[%s2327_s1 + $0x268] sm:$0xff] %v341_v27 }
  0xed   :  { %v92_v40 = vld [vmem:[%s2326_s0 + $0x2a0] sm:$0xff]  ;;  %v93_v41 = vld [vmem:[%s2326_s0 + $0x2a8] sm:$0xff]  ;;  %v94_v42 = vld [vmem:[%s2326_s0 + $0x2b0] sm:$0xff] }
  0xee   :  { %598 = vst [vmem:[%s2327_s1 + $0x270] sm:$0xff] %v342_v31  ;;  %599 = vst [vmem:[%s2327_s1 + $0x278] sm:$0xff] %v343_v32  ;;  %v348_v43 = vadd.f32 %v92_v40, %v92_v40  ;;  %v349_v44 = vadd.f32 %v93_v41, %v93_v41  ;;  %v350_v45 = vadd.f32 %v94_v42, %v94_v42 }
  0xef   :  { %600 = vst [vmem:[%s2327_s1 + $0x280] sm:$0xff] %v344_v33 }
  0xf6   :  { %v95_v46 = vld [vmem:[%s2326_s0 + $0x2b8] sm:$0xff]  ;;  %v96_v47 = vld [vmem:[%s2326_s0 + $0x2c0] sm:$0xff]  ;;  %v97_v48 = vld [vmem:[%s2326_s0 + $0x2c8] sm:$0xff] }
  0xf7   :  { %601 = vst [vmem:[%s2327_s1 + $0x288] sm:$0xff] %v345_v37  ;;  %602 = vst [vmem:[%s2327_s1 + $0x290] sm:$0xff] %v346_v38  ;;  %v351_v49 = vadd.f32 %v95_v46, %v95_v46  ;;  %v352_v50 = vadd.f32 %v96_v47, %v96_v47  ;;  %v353_v51 = vadd.f32 %v97_v48, %v97_v48 }
  0xf8   :  { %603 = vst [vmem:[%s2327_s1 + $0x298] sm:$0xff] %v347_v39 }
  0xff   :  { %v98_v52 = vld [vmem:[%s2326_s0 + $0x2d0] sm:$0xff]  ;;  %v99_v53 = vld [vmem:[%s2326_s0 + $0x2d8] sm:$0xff]  ;;  %v100_v54 = vld [vmem:[%s2326_s0 + $0x2e0] sm:$0xff] }
 0x100   :  { %604 = vst [vmem:[%s2327_s1 + $0x2a0] sm:$0xff] %v348_v43  ;;  %605 = vst [vmem:[%s2327_s1 + $0x2a8] sm:$0xff] %v349_v44  ;;  %v354_v55 = vadd.f32 %v98_v52, %v98_v52  ;;  %v355_v56 = vadd.f32 %v99_v53, %v99_v53  ;;  %v356_v57 = vadd.f32 %v100_v54, %v100_v54 }
 0x101   :  { %606 = vst [vmem:[%s2327_s1 + $0x2b0] sm:$0xff] %v350_v45 }
 0x108   :  { %v101_v58 = vld [vmem:[%s2326_s0 + $0x2e8] sm:$0xff]  ;;  %v102_v59 = vld [vmem:[%s2326_s0 + $0x2f0] sm:$0xff]  ;;  %v103_v60 = vld [vmem:[%s2326_s0 + $0x2f8] sm:$0xff] }
 0x109   :  { %607 = vst [vmem:[%s2327_s1 + $0x2b8] sm:$0xff] %v351_v49  ;;  %608 = vst [vmem:[%s2327_s1 + $0x2c0] sm:$0xff] %v352_v50  ;;  %v357_v61 = vadd.f32 %v101_v58, %v101_v58  ;;  %v358_v62 = vadd.f32 %v102_v59, %v102_v59  ;;  %v359_v63 = vadd.f32 %v103_v60, %v103_v60 }
 0x10a   :  { %609 = vst [vmem:[%s2327_s1 + $0x2c8] sm:$0xff] %v353_v51 }
 0x111   :  { %v104_v0 = vld [vmem:[%s2326_s0 + $0x300] sm:$0xff]  ;;  %v105_v1 = vld [vmem:[%s2326_s0 + $0x308] sm:$0xff]  ;;  %v106_v2 = vld [vmem:[%s2326_s0 + $0x310] sm:$0xff] }
 0x112   :  { %610 = vst [vmem:[%s2327_s1 + $0x2d0] sm:$0xff] %v354_v55  ;;  %611 = vst [vmem:[%s2327_s1 + $0x2d8] sm:$0xff] %v355_v56  ;;  %v360_v3 = vadd.f32 %v104_v0, %v104_v0  ;;  %v361_v4 = vadd.f32 %v105_v1, %v105_v1  ;;  %v362_v5 = vadd.f32 %v106_v2, %v106_v2 }
 0x113   :  { %612 = vst [vmem:[%s2327_s1 + $0x2e0] sm:$0xff] %v356_v57 }
 0x11a   :  { %v107_v6 = vld [vmem:[%s2326_s0 + $0x318] sm:$0xff]  ;;  %v108_v7 = vld [vmem:[%s2326_s0 + $0x320] sm:$0xff]  ;;  %v109_v8 = vld [vmem:[%s2326_s0 + $0x328] sm:$0xff] }
 0x11b   :  { %613 = vst [vmem:[%s2327_s1 + $0x2e8] sm:$0xff] %v357_v61  ;;  %614 = vst [vmem:[%s2327_s1 + $0x2f0] sm:$0xff] %v358_v62  ;;  %v363_v9 = vadd.f32 %v107_v6, %v107_v6  ;;  %v364_v10 = vadd.f32 %v108_v7, %v108_v7  ;;  %v365_v11 = vadd.f32 %v109_v8, %v109_v8 }
 0x11c   :  { %615 = vst [vmem:[%s2327_s1 + $0x2f8] sm:$0xff] %v359_v63 }
 0x123   :  { %v110_v12 = vld [vmem:[%s2326_s0 + $0x330] sm:$0xff]  ;;  %v111_v13 = vld [vmem:[%s2326_s0 + $0x338] sm:$0xff]  ;;  %v112_v14 = vld [vmem:[%s2326_s0 + $0x340] sm:$0xff] }
 0x124   :  { %616 = vst [vmem:[%s2327_s1 + $0x300] sm:$0xff] %v360_v3  ;;  %617 = vst [vmem:[%s2327_s1 + $0x308] sm:$0xff] %v361_v4  ;;  %v366_v15 = vadd.f32 %v110_v12, %v110_v12  ;;  %v367_v16 = vadd.f32 %v111_v13, %v111_v13  ;;  %v368_v17 = vadd.f32 %v112_v14, %v112_v14 }
 0x125   :  { %618 = vst [vmem:[%s2327_s1 + $0x310] sm:$0xff] %v362_v5 }
 0x12c   :  { %v113_v18 = vld [vmem:[%s2326_s0 + $0x348] sm:$0xff]  ;;  %v114_v19 = vld [vmem:[%s2326_s0 + $0x350] sm:$0xff]  ;;  %v115_v20 = vld [vmem:[%s2326_s0 + $0x358] sm:$0xff] }
 0x12d   :  { %619 = vst [vmem:[%s2327_s1 + $0x318] sm:$0xff] %v363_v9  ;;  %620 = vst [vmem:[%s2327_s1 + $0x320] sm:$0xff] %v364_v10  ;;  %v369_v21 = vadd.f32 %v113_v18, %v113_v18  ;;  %v370_v22 = vadd.f32 %v114_v19, %v114_v19  ;;  %v371_v23 = vadd.f32 %v115_v20, %v115_v20 }
 0x12e   :  { %621 = vst [vmem:[%s2327_s1 + $0x328] sm:$0xff] %v365_v11 }
 0x135   :  { %v116_v24 = vld [vmem:[%s2326_s0 + $0x360] sm:$0xff]  ;;  %v117_v25 = vld [vmem:[%s2326_s0 + $0x368] sm:$0xff]  ;;  %v118_v26 = vld [vmem:[%s2326_s0 + $0x370] sm:$0xff] }
 0x136   :  { %622 = vst [vmem:[%s2327_s1 + $0x330] sm:$0xff] %v366_v15  ;;  %623 = vst [vmem:[%s2327_s1 + $0x338] sm:$0xff] %v367_v16  ;;  %v372_v27 = vadd.f32 %v116_v24, %v116_v24  ;;  %v373_v28 = vadd.f32 %v117_v25, %v117_v25  ;;  %v374_v29 = vadd.f32 %v118_v26, %v118_v26 }
 0x137   :  { %624 = vst [vmem:[%s2327_s1 + $0x340] sm:$0xff] %v368_v17 }
 0x13e   :  { %v119_v30 = vld [vmem:[%s2326_s0 + $0x378] sm:$0xff]  ;;  %v120_v31 = vld [vmem:[%s2326_s0 + $0x380] sm:$0xff]  ;;  %v121_v32 = vld [vmem:[%s2326_s0 + $0x388] sm:$0xff] }
 0x13f   :  { %625 = vst [vmem:[%s2327_s1 + $0x348] sm:$0xff] %v369_v21  ;;  %626 = vst [vmem:[%s2327_s1 + $0x350] sm:$0xff] %v370_v22  ;;  %v375_v33 = vadd.f32 %v119_v30, %v119_v30  ;;  %v376_v34 = vadd.f32 %v120_v31, %v120_v31  ;;  %v377_v35 = vadd.f32 %v121_v32, %v121_v32 }
 0x140   :  { %627 = vst [vmem:[%s2327_s1 + $0x358] sm:$0xff] %v371_v23 }
 0x147   :  { %v122_v36 = vld [vmem:[%s2326_s0 + $0x390] sm:$0xff]  ;;  %v123_v37 = vld [vmem:[%s2326_s0 + $0x398] sm:$0xff]  ;;  %v124_v38 = vld [vmem:[%s2326_s0 + $0x3a0] sm:$0xff] }
 0x148   :  { %628 = vst [vmem:[%s2327_s1 + $0x360] sm:$0xff] %v372_v27  ;;  %629 = vst [vmem:[%s2327_s1 + $0x368] sm:$0xff] %v373_v28  ;;  %v378_v39 = vadd.f32 %v122_v36, %v122_v36  ;;  %v379_v40 = vadd.f32 %v123_v37, %v123_v37  ;;  %v380_v41 = vadd.f32 %v124_v38, %v124_v38 }
 0x149   :  { %630 = vst [vmem:[%s2327_s1 + $0x370] sm:$0xff] %v374_v29 }
 0x150   :  { %v125_v42 = vld [vmem:[%s2326_s0 + $0x3a8] sm:$0xff]  ;;  %v126_v43 = vld [vmem:[%s2326_s0 + $0x3b0] sm:$0xff]  ;;  %v127_v44 = vld [vmem:[%s2326_s0 + $0x3b8] sm:$0xff] }
 0x151   :  { %631 = vst [vmem:[%s2327_s1 + $0x378] sm:$0xff] %v375_v33  ;;  %632 = vst [vmem:[%s2327_s1 + $0x380] sm:$0xff] %v376_v34  ;;  %v381_v45 = vadd.f32 %v125_v42, %v125_v42  ;;  %v382_v46 = vadd.f32 %v126_v43, %v126_v43  ;;  %v383_v47 = vadd.f32 %v127_v44, %v127_v44 }
 0x152   :  { %633 = vst [vmem:[%s2327_s1 + $0x388] sm:$0xff] %v377_v35 }
 0x159   :  { %v128_v48 = vld [vmem:[%s2326_s0 + $0x3c0] sm:$0xff]  ;;  %v129_v49 = vld [vmem:[%s2326_s0 + $0x3c8] sm:$0xff]  ;;  %v130_v50 = vld [vmem:[%s2326_s0 + $0x3d0] sm:$0xff] }
 0x15a   :  { %634 = vst [vmem:[%s2327_s1 + $0x390] sm:$0xff] %v378_v39  ;;  %635 = vst [vmem:[%s2327_s1 + $0x398] sm:$0xff] %v379_v40  ;;  %v384_v51 = vadd.f32 %v128_v48, %v128_v48  ;;  %v385_v52 = vadd.f32 %v129_v49, %v129_v49  ;;  %v386_v53 = vadd.f32 %v130_v50, %v130_v50 }
 0x15b   :  { %636 = vst [vmem:[%s2327_s1 + $0x3a0] sm:$0xff] %v380_v41 }
 0x162   :  { %v131_v54 = vld [vmem:[%s2326_s0 + $0x3d8] sm:$0xff]  ;;  %v132_v55 = vld [vmem:[%s2326_s0 + $0x3e0] sm:$0xff]  ;;  %v133_v56 = vld [vmem:[%s2326_s0 + $0x3e8] sm:$0xff] }
 0x163   :  { %637 = vst [vmem:[%s2327_s1 + $0x3a8] sm:$0xff] %v381_v45  ;;  %638 = vst [vmem:[%s2327_s1 + $0x3b0] sm:$0xff] %v382_v46  ;;  %v387_v57 = vadd.f32 %v131_v54, %v131_v54  ;;  %v388_v58 = vadd.f32 %v132_v55, %v132_v55  ;;  %v389_v59 = vadd.f32 %v133_v56, %v133_v56 }
 0x164   :  { %639 = vst [vmem:[%s2327_s1 + $0x3b8] sm:$0xff] %v383_v47 }
 0x16b   :  { %v134_v60 = vld [vmem:[%s2326_s0 + $0x3f0] sm:$0xff]  ;;  %v135_v61 = vld [vmem:[%s2326_s0 + $0x3f8] sm:$0xff]  ;;  %v136_v62 = vld [vmem:[%s2326_s0 + $0x400] sm:$0xff] }
 0x16c   :  { %640 = vst [vmem:[%s2327_s1 + $0x3c0] sm:$0xff] %v384_v51  ;;  %641 = vst [vmem:[%s2327_s1 + $0x3c8] sm:$0xff] %v385_v52  ;;  %v390_v63 = vadd.f32 %v134_v60, %v134_v60  ;;  %v391_v0 = vadd.f32 %v135_v61, %v135_v61  ;;  %v392_v1 = vadd.f32 %v136_v62, %v136_v62 }
 0x16d   :  { %642 = vst [vmem:[%s2327_s1 + $0x3d0] sm:$0xff] %v386_v53 }
 0x174   :  { %v137_v2 = vld [vmem:[%s2326_s0 + $0x408] sm:$0xff]  ;;  %v138_v3 = vld [vmem:[%s2326_s0 + $0x410] sm:$0xff]  ;;  %v139_v4 = vld [vmem:[%s2326_s0 + $0x418] sm:$0xff] }
 0x175   :  { %643 = vst [vmem:[%s2327_s1 + $0x3d8] sm:$0xff] %v387_v57  ;;  %644 = vst [vmem:[%s2327_s1 + $0x3e0] sm:$0xff] %v388_v58  ;;  %v393_v5 = vadd.f32 %v137_v2, %v137_v2  ;;  %v394_v6 = vadd.f32 %v138_v3, %v138_v3  ;;  %v395_v7 = vadd.f32 %v139_v4, %v139_v4 }
 0x176   :  { %645 = vst [vmem:[%s2327_s1 + $0x3e8] sm:$0xff] %v389_v59 }
 0x17d   :  { %v140_v8 = vld [vmem:[%s2326_s0 + $0x420] sm:$0xff]  ;;  %v141_v9 = vld [vmem:[%s2326_s0 + $0x428] sm:$0xff]  ;;  %v142_v10 = vld [vmem:[%s2326_s0 + $0x430] sm:$0xff] }
 0x17e   :  { %646 = vst [vmem:[%s2327_s1 + $0x3f0] sm:$0xff] %v390_v63  ;;  %647 = vst [vmem:[%s2327_s1 + $0x3f8] sm:$0xff] %v391_v0  ;;  %v396_v11 = vadd.f32 %v140_v8, %v140_v8  ;;  %v397_v12 = vadd.f32 %v141_v9, %v141_v9  ;;  %v398_v13 = vadd.f32 %v142_v10, %v142_v10 }
 0x17f   :  { %648 = vst [vmem:[%s2327_s1 + $0x400] sm:$0xff] %v392_v1 }
 0x186   :  { %v143_v14 = vld [vmem:[%s2326_s0 + $0x438] sm:$0xff]  ;;  %v144_v15 = vld [vmem:[%s2326_s0 + $0x440] sm:$0xff]  ;;  %v145_v16 = vld [vmem:[%s2326_s0 + $0x448] sm:$0xff] }
 0x187   :  { %649 = vst [vmem:[%s2327_s1 + $0x408] sm:$0xff] %v393_v5  ;;  %650 = vst [vmem:[%s2327_s1 + $0x410] sm:$0xff] %v394_v6  ;;  %v399_v17 = vadd.f32 %v143_v14, %v143_v14  ;;  %v400_v18 = vadd.f32 %v144_v15, %v144_v15  ;;  %v401_v19 = vadd.f32 %v145_v16, %v145_v16 }
 0x188   :  { %651 = vst [vmem:[%s2327_s1 + $0x418] sm:$0xff] %v395_v7 }
 0x18f   :  { %v146_v20 = vld [vmem:[%s2326_s0 + $0x450] sm:$0xff]  ;;  %v147_v21 = vld [vmem:[%s2326_s0 + $0x458] sm:$0xff]  ;;  %v148_v22 = vld [vmem:[%s2326_s0 + $0x460] sm:$0xff] }
 0x190   :  { %652 = vst [vmem:[%s2327_s1 + $0x420] sm:$0xff] %v396_v11  ;;  %653 = vst [vmem:[%s2327_s1 + $0x428] sm:$0xff] %v397_v12  ;;  %v402_v23 = vadd.f32 %v146_v20, %v146_v20  ;;  %v403_v24 = vadd.f32 %v147_v21, %v147_v21  ;;  %v404_v25 = vadd.f32 %v148_v22, %v148_v22 }
 0x191   :  { %654 = vst [vmem:[%s2327_s1 + $0x430] sm:$0xff] %v398_v13 }
 0x198   :  { %v149_v26 = vld [vmem:[%s2326_s0 + $0x468] sm:$0xff]  ;;  %v150_v27 = vld [vmem:[%s2326_s0 + $0x470] sm:$0xff]  ;;  %v151_v28 = vld [vmem:[%s2326_s0 + $0x478] sm:$0xff] }
 0x199   :  { %655 = vst [vmem:[%s2327_s1 + $0x438] sm:$0xff] %v399_v17  ;;  %656 = vst [vmem:[%s2327_s1 + $0x440] sm:$0xff] %v400_v18  ;;  %v405_v29 = vadd.f32 %v149_v26, %v149_v26  ;;  %v406_v30 = vadd.f32 %v150_v27, %v150_v27  ;;  %v407_v31 = vadd.f32 %v151_v28, %v151_v28 }
 0x19a   :  { %657 = vst [vmem:[%s2327_s1 + $0x448] sm:$0xff] %v401_v19 }
 0x1a1   :  { %v152_v32 = vld [vmem:[%s2326_s0 + $0x480] sm:$0xff]  ;;  %v153_v33 = vld [vmem:[%s2326_s0 + $0x488] sm:$0xff]  ;;  %v154_v34 = vld [vmem:[%s2326_s0 + $0x490] sm:$0xff] }
 0x1a2   :  { %658 = vst [vmem:[%s2327_s1 + $0x450] sm:$0xff] %v402_v23  ;;  %659 = vst [vmem:[%s2327_s1 + $0x458] sm:$0xff] %v403_v24  ;;  %v408_v35 = vadd.f32 %v152_v32, %v152_v32  ;;  %v409_v36 = vadd.f32 %v153_v33, %v153_v33  ;;  %v410_v37 = vadd.f32 %v154_v34, %v154_v34 }
 0x1a3   :  { %660 = vst [vmem:[%s2327_s1 + $0x460] sm:$0xff] %v404_v25 }
 0x1aa   :  { %v155_v38 = vld [vmem:[%s2326_s0 + $0x498] sm:$0xff]  ;;  %v156_v39 = vld [vmem:[%s2326_s0 + $0x4a0] sm:$0xff]  ;;  %v157_v40 = vld [vmem:[%s2326_s0 + $0x4a8] sm:$0xff] }
 0x1ab   :  { %661 = vst [vmem:[%s2327_s1 + $0x468] sm:$0xff] %v405_v29  ;;  %662 = vst [vmem:[%s2327_s1 + $0x470] sm:$0xff] %v406_v30  ;;  %v411_v41 = vadd.f32 %v155_v38, %v155_v38  ;;  %v412_v42 = vadd.f32 %v156_v39, %v156_v39  ;;  %v413_v43 = vadd.f32 %v157_v40, %v157_v40 }
 0x1ac   :  { %663 = vst [vmem:[%s2327_s1 + $0x478] sm:$0xff] %v407_v31 }
 0x1b3   :  { %v158_v44 = vld [vmem:[%s2326_s0 + $0x4b0] sm:$0xff]  ;;  %v159_v45 = vld [vmem:[%s2326_s0 + $0x4b8] sm:$0xff]  ;;  %v160_v46 = vld [vmem:[%s2326_s0 + $0x4c0] sm:$0xff] }
 0x1b4   :  { %664 = vst [vmem:[%s2327_s1 + $0x480] sm:$0xff] %v408_v35  ;;  %665 = vst [vmem:[%s2327_s1 + $0x488] sm:$0xff] %v409_v36  ;;  %v414_v47 = vadd.f32 %v158_v44, %v158_v44  ;;  %v415_v48 = vadd.f32 %v159_v45, %v159_v45  ;;  %v416_v49 = vadd.f32 %v160_v46, %v160_v46 }
 0x1b5   :  { %666 = vst [vmem:[%s2327_s1 + $0x490] sm:$0xff] %v410_v37 }
 0x1bc   :  { %v161_v50 = vld [vmem:[%s2326_s0 + $0x4c8] sm:$0xff]  ;;  %v162_v51 = vld [vmem:[%s2326_s0 + $0x4d0] sm:$0xff]  ;;  %v163_v52 = vld [vmem:[%s2326_s0 + $0x4d8] sm:$0xff] }
 0x1bd   :  { %667 = vst [vmem:[%s2327_s1 + $0x498] sm:$0xff] %v411_v41  ;;  %668 = vst [vmem:[%s2327_s1 + $0x4a0] sm:$0xff] %v412_v42  ;;  %v417_v53 = vadd.f32 %v161_v50, %v161_v50  ;;  %v418_v54 = vadd.f32 %v162_v51, %v162_v51  ;;  %v419_v55 = vadd.f32 %v163_v52, %v163_v52 }
 0x1be   :  { %669 = vst [vmem:[%s2327_s1 + $0x4a8] sm:$0xff] %v413_v43 }
 0x1c5   :  { %v164_v56 = vld [vmem:[%s2326_s0 + $0x4e0] sm:$0xff]  ;;  %v165_v57 = vld [vmem:[%s2326_s0 + $0x4e8] sm:$0xff]  ;;  %v166_v58 = vld [vmem:[%s2326_s0 + $0x4f0] sm:$0xff] }
 0x1c6   :  { %670 = vst [vmem:[%s2327_s1 + $0x4b0] sm:$0xff] %v414_v47  ;;  %671 = vst [vmem:[%s2327_s1 + $0x4b8] sm:$0xff] %v415_v48  ;;  %v420_v59 = vadd.f32 %v164_v56, %v164_v56  ;;  %v421_v60 = vadd.f32 %v165_v57, %v165_v57  ;;  %v422_v61 = vadd.f32 %v166_v58, %v166_v58 }
 0x1c7   :  { %672 = vst [vmem:[%s2327_s1 + $0x4c0] sm:$0xff] %v416_v49 }
 0x1ce   :  { %v167_v62 = vld [vmem:[%s2326_s0 + $0x4f8] sm:$0xff]  ;;  %v168_v63 = vld [vmem:[%s2326_s0 + $0x500] sm:$0xff]  ;;  %v169_v0 = vld [vmem:[%s2326_s0 + $0x508] sm:$0xff] }
 0x1cf   :  { %673 = vst [vmem:[%s2327_s1 + $0x4c8] sm:$0xff] %v417_v53  ;;  %674 = vst [vmem:[%s2327_s1 + $0x4d0] sm:$0xff] %v418_v54  ;;  %v423_v1 = vadd.f32 %v167_v62, %v167_v62  ;;  %v424_v2 = vadd.f32 %v168_v63, %v168_v63  ;;  %v425_v3 = vadd.f32 %v169_v0, %v169_v0 }
 0x1d0   :  { %675 = vst [vmem:[%s2327_s1 + $0x4d8] sm:$0xff] %v419_v55 }
 0x1d7   :  { %v170_v4 = vld [vmem:[%s2326_s0 + $0x510] sm:$0xff]  ;;  %v171_v5 = vld [vmem:[%s2326_s0 + $0x518] sm:$0xff]  ;;  %v172_v6 = vld [vmem:[%s2326_s0 + $0x520] sm:$0xff] }
 0x1d8   :  { %676 = vst [vmem:[%s2327_s1 + $0x4e0] sm:$0xff] %v420_v59  ;;  %677 = vst [vmem:[%s2327_s1 + $0x4e8] sm:$0xff] %v421_v60  ;;  %v426_v7 = vadd.f32 %v170_v4, %v170_v4  ;;  %v427_v8 = vadd.f32 %v171_v5, %v171_v5  ;;  %v428_v9 = vadd.f32 %v172_v6, %v172_v6 }
 0x1d9   :  { %678 = vst [vmem:[%s2327_s1 + $0x4f0] sm:$0xff] %v422_v61 }
 0x1e0   :  { %v173_v10 = vld [vmem:[%s2326_s0 + $0x528] sm:$0xff]  ;;  %v174_v11 = vld [vmem:[%s2326_s0 + $0x530] sm:$0xff]  ;;  %v175_v12 = vld [vmem:[%s2326_s0 + $0x538] sm:$0xff] }
 0x1e1   :  { %679 = vst [vmem:[%s2327_s1 + $0x4f8] sm:$0xff] %v423_v1  ;;  %680 = vst [vmem:[%s2327_s1 + $0x500] sm:$0xff] %v424_v2  ;;  %v429_v13 = vadd.f32 %v173_v10, %v173_v10  ;;  %v430_v14 = vadd.f32 %v174_v11, %v174_v11  ;;  %v431_v15 = vadd.f32 %v175_v12, %v175_v12 }
 0x1e2   :  { %681 = vst [vmem:[%s2327_s1 + $0x508] sm:$0xff] %v425_v3 }
 0x1e9   :  { %v176_v16 = vld [vmem:[%s2326_s0 + $0x540] sm:$0xff]  ;;  %v177_v17 = vld [vmem:[%s2326_s0 + $0x548] sm:$0xff]  ;;  %v178_v18 = vld [vmem:[%s2326_s0 + $0x550] sm:$0xff] }
 0x1ea   :  { %682 = vst [vmem:[%s2327_s1 + $0x510] sm:$0xff] %v426_v7  ;;  %683 = vst [vmem:[%s2327_s1 + $0x518] sm:$0xff] %v427_v8  ;;  %v432_v19 = vadd.f32 %v176_v16, %v176_v16  ;;  %v433_v20 = vadd.f32 %v177_v17, %v177_v17  ;;  %v434_v21 = vadd.f32 %v178_v18, %v178_v18 }
 0x1eb   :  { %684 = vst [vmem:[%s2327_s1 + $0x520] sm:$0xff] %v428_v9 }
 0x1f2   :  { %v179_v22 = vld [vmem:[%s2326_s0 + $0x558] sm:$0xff]  ;;  %v180_v23 = vld [vmem:[%s2326_s0 + $0x560] sm:$0xff]  ;;  %v181_v24 = vld [vmem:[%s2326_s0 + $0x568] sm:$0xff] }
 0x1f3   :  { %685 = vst [vmem:[%s2327_s1 + $0x528] sm:$0xff] %v429_v13  ;;  %686 = vst [vmem:[%s2327_s1 + $0x530] sm:$0xff] %v430_v14  ;;  %v435_v25 = vadd.f32 %v179_v22, %v179_v22  ;;  %v436_v26 = vadd.f32 %v180_v23, %v180_v23  ;;  %v437_v27 = vadd.f32 %v181_v24, %v181_v24 }
 0x1f4   :  { %687 = vst [vmem:[%s2327_s1 + $0x538] sm:$0xff] %v431_v15 }
 0x1fb   :  { %v182_v28 = vld [vmem:[%s2326_s0 + $0x570] sm:$0xff]  ;;  %v183_v29 = vld [vmem:[%s2326_s0 + $0x578] sm:$0xff]  ;;  %v184_v30 = vld [vmem:[%s2326_s0 + $0x580] sm:$0xff] }
 0x1fc   :  { %688 = vst [vmem:[%s2327_s1 + $0x540] sm:$0xff] %v432_v19  ;;  %689 = vst [vmem:[%s2327_s1 + $0x548] sm:$0xff] %v433_v20  ;;  %v438_v31 = vadd.f32 %v182_v28, %v182_v28  ;;  %v439_v32 = vadd.f32 %v183_v29, %v183_v29  ;;  %v440_v33 = vadd.f32 %v184_v30, %v184_v30 }
 0x1fd   :  { %690 = vst [vmem:[%s2327_s1 + $0x550] sm:$0xff] %v434_v21 }
 0x204   :  { %v185_v34 = vld [vmem:[%s2326_s0 + $0x588] sm:$0xff]  ;;  %v186_v35 = vld [vmem:[%s2326_s0 + $0x590] sm:$0xff]  ;;  %v187_v36 = vld [vmem:[%s2326_s0 + $0x598] sm:$0xff] }
 0x205   :  { %691 = vst [vmem:[%s2327_s1 + $0x558] sm:$0xff] %v435_v25  ;;  %692 = vst [vmem:[%s2327_s1 + $0x560] sm:$0xff] %v436_v26  ;;  %v441_v37 = vadd.f32 %v185_v34, %v185_v34  ;;  %v442_v38 = vadd.f32 %v186_v35, %v186_v35  ;;  %v443_v39 = vadd.f32 %v187_v36, %v187_v36 }
 0x206   :  { %693 = vst [vmem:[%s2327_s1 + $0x568] sm:$0xff] %v437_v27 }
 0x20d   :  { %v188_v40 = vld [vmem:[%s2326_s0 + $0x5a0] sm:$0xff]  ;;  %v189_v41 = vld [vmem:[%s2326_s0 + $0x5a8] sm:$0xff]  ;;  %v190_v42 = vld [vmem:[%s2326_s0 + $0x5b0] sm:$0xff] }
 0x20e   :  { %694 = vst [vmem:[%s2327_s1 + $0x570] sm:$0xff] %v438_v31  ;;  %695 = vst [vmem:[%s2327_s1 + $0x578] sm:$0xff] %v439_v32  ;;  %v444_v43 = vadd.f32 %v188_v40, %v188_v40  ;;  %v445_v44 = vadd.f32 %v189_v41, %v189_v41  ;;  %v446_v45 = vadd.f32 %v190_v42, %v190_v42 }
 0x20f   :  { %696 = vst [vmem:[%s2327_s1 + $0x580] sm:$0xff] %v440_v33 }
 0x216   :  { %v191_v46 = vld [vmem:[%s2326_s0 + $0x5b8] sm:$0xff]  ;;  %v192_v47 = vld [vmem:[%s2326_s0 + $0x5c0] sm:$0xff]  ;;  %v193_v48 = vld [vmem:[%s2326_s0 + $0x5c8] sm:$0xff] }
 0x217   :  { %697 = vst [vmem:[%s2327_s1 + $0x588] sm:$0xff] %v441_v37  ;;  %698 = vst [vmem:[%s2327_s1 + $0x590] sm:$0xff] %v442_v38  ;;  %v447_v49 = vadd.f32 %v191_v46, %v191_v46  ;;  %v448_v50 = vadd.f32 %v192_v47, %v192_v47  ;;  %v449_v51 = vadd.f32 %v193_v48, %v193_v48 }
 0x218   :  { %699 = vst [vmem:[%s2327_s1 + $0x598] sm:$0xff] %v443_v39 }
 0x21f   :  { %v194_v52 = vld [vmem:[%s2326_s0 + $0x5d0] sm:$0xff]  ;;  %v195_v53 = vld [vmem:[%s2326_s0 + $0x5d8] sm:$0xff]  ;;  %v196_v54 = vld [vmem:[%s2326_s0 + $0x5e0] sm:$0xff] }
 0x220   :  { %700 = vst [vmem:[%s2327_s1 + $0x5a0] sm:$0xff] %v444_v43  ;;  %701 = vst [vmem:[%s2327_s1 + $0x5a8] sm:$0xff] %v445_v44  ;;  %v450_v55 = vadd.f32 %v194_v52, %v194_v52  ;;  %v451_v56 = vadd.f32 %v195_v53, %v195_v53  ;;  %v452_v57 = vadd.f32 %v196_v54, %v196_v54 }
 0x221   :  { %702 = vst [vmem:[%s2327_s1 + $0x5b0] sm:$0xff] %v446_v45 }
 0x228   :  { %v197_v58 = vld [vmem:[%s2326_s0 + $0x5e8] sm:$0xff]  ;;  %v198_v59 = vld [vmem:[%s2326_s0 + $0x5f0] sm:$0xff]  ;;  %v199_v60 = vld [vmem:[%s2326_s0 + $0x5f8] sm:$0xff] }
 0x229   :  { %703 = vst [vmem:[%s2327_s1 + $0x5b8] sm:$0xff] %v447_v49  ;;  %704 = vst [vmem:[%s2327_s1 + $0x5c0] sm:$0xff] %v448_v50  ;;  %v453_v61 = vadd.f32 %v197_v58, %v197_v58  ;;  %v454_v62 = vadd.f32 %v198_v59, %v198_v59  ;;  %v455_v63 = vadd.f32 %v199_v60, %v199_v60 }
 0x22a   :  { %705 = vst [vmem:[%s2327_s1 + $0x5c8] sm:$0xff] %v449_v51 }
 0x231   :  { %v200_v0 = vld [vmem:[%s2326_s0 + $0x600] sm:$0xff]  ;;  %v201_v1 = vld [vmem:[%s2326_s0 + $0x608] sm:$0xff]  ;;  %v202_v2 = vld [vmem:[%s2326_s0 + $0x610] sm:$0xff] }
 0x232   :  { %706 = vst [vmem:[%s2327_s1 + $0x5d0] sm:$0xff] %v450_v55  ;;  %707 = vst [vmem:[%s2327_s1 + $0x5d8] sm:$0xff] %v451_v56  ;;  %v456_v3 = vadd.f32 %v200_v0, %v200_v0  ;;  %v457_v4 = vadd.f32 %v201_v1, %v201_v1  ;;  %v458_v5 = vadd.f32 %v202_v2, %v202_v2 }
 0x233   :  { %708 = vst [vmem:[%s2327_s1 + $0x5e0] sm:$0xff] %v452_v57 }
 0x23a   :  { %v203_v6 = vld [vmem:[%s2326_s0 + $0x618] sm:$0xff]  ;;  %v204_v7 = vld [vmem:[%s2326_s0 + $0x620] sm:$0xff]  ;;  %v205_v8 = vld [vmem:[%s2326_s0 + $0x628] sm:$0xff] }
 0x23b   :  { %709 = vst [vmem:[%s2327_s1 + $0x5e8] sm:$0xff] %v453_v61  ;;  %710 = vst [vmem:[%s2327_s1 + $0x5f0] sm:$0xff] %v454_v62  ;;  %v459_v9 = vadd.f32 %v203_v6, %v203_v6  ;;  %v460_v10 = vadd.f32 %v204_v7, %v204_v7  ;;  %v461_v11 = vadd.f32 %v205_v8, %v205_v8 }
 0x23c   :  { %711 = vst [vmem:[%s2327_s1 + $0x5f8] sm:$0xff] %v455_v63 }
 0x243   :  { %v206_v12 = vld [vmem:[%s2326_s0 + $0x630] sm:$0xff]  ;;  %v207_v13 = vld [vmem:[%s2326_s0 + $0x638] sm:$0xff]  ;;  %v208_v14 = vld [vmem:[%s2326_s0 + $0x640] sm:$0xff] }
 0x244   :  { %712 = vst [vmem:[%s2327_s1 + $0x600] sm:$0xff] %v456_v3  ;;  %713 = vst [vmem:[%s2327_s1 + $0x608] sm:$0xff] %v457_v4  ;;  %v462_v15 = vadd.f32 %v206_v12, %v206_v12  ;;  %v463_v16 = vadd.f32 %v207_v13, %v207_v13  ;;  %v464_v17 = vadd.f32 %v208_v14, %v208_v14 }
 0x245   :  { %714 = vst [vmem:[%s2327_s1 + $0x610] sm:$0xff] %v458_v5 }
 0x24c   :  { %v209_v18 = vld [vmem:[%s2326_s0 + $0x648] sm:$0xff]  ;;  %v210_v19 = vld [vmem:[%s2326_s0 + $0x650] sm:$0xff]  ;;  %v211_v20 = vld [vmem:[%s2326_s0 + $0x658] sm:$0xff] }
 0x24d   :  { %715 = vst [vmem:[%s2327_s1 + $0x618] sm:$0xff] %v459_v9  ;;  %716 = vst [vmem:[%s2327_s1 + $0x620] sm:$0xff] %v460_v10  ;;  %v465_v21 = vadd.f32 %v209_v18, %v209_v18  ;;  %v466_v22 = vadd.f32 %v210_v19, %v210_v19  ;;  %v467_v23 = vadd.f32 %v211_v20, %v211_v20 }
 0x24e   :  { %717 = vst [vmem:[%s2327_s1 + $0x628] sm:$0xff] %v461_v11 }
 0x255   :  { %v212_v24 = vld [vmem:[%s2326_s0 + $0x660] sm:$0xff]  ;;  %v213_v25 = vld [vmem:[%s2326_s0 + $0x668] sm:$0xff]  ;;  %v214_v26 = vld [vmem:[%s2326_s0 + $0x670] sm:$0xff] }
 0x256   :  { %718 = vst [vmem:[%s2327_s1 + $0x630] sm:$0xff] %v462_v15  ;;  %719 = vst [vmem:[%s2327_s1 + $0x638] sm:$0xff] %v463_v16  ;;  %v468_v27 = vadd.f32 %v212_v24, %v212_v24  ;;  %v469_v28 = vadd.f32 %v213_v25, %v213_v25  ;;  %v470_v29 = vadd.f32 %v214_v26, %v214_v26 }
 0x257   :  { %720 = vst [vmem:[%s2327_s1 + $0x640] sm:$0xff] %v464_v17 }
 0x25e   :  { %v215_v30 = vld [vmem:[%s2326_s0 + $0x678] sm:$0xff]  ;;  %v216_v31 = vld [vmem:[%s2326_s0 + $0x680] sm:$0xff]  ;;  %v217_v32 = vld [vmem:[%s2326_s0 + $0x688] sm:$0xff] }
 0x25f   :  { %721 = vst [vmem:[%s2327_s1 + $0x648] sm:$0xff] %v465_v21  ;;  %722 = vst [vmem:[%s2327_s1 + $0x650] sm:$0xff] %v466_v22  ;;  %v471_v33 = vadd.f32 %v215_v30, %v215_v30  ;;  %v472_v34 = vadd.f32 %v216_v31, %v216_v31  ;;  %v473_v35 = vadd.f32 %v217_v32, %v217_v32 }
 0x260   :  { %723 = vst [vmem:[%s2327_s1 + $0x658] sm:$0xff] %v467_v23 }
 0x267   :  { %v218_v36 = vld [vmem:[%s2326_s0 + $0x690] sm:$0xff]  ;;  %v219_v37 = vld [vmem:[%s2326_s0 + $0x698] sm:$0xff]  ;;  %v220_v38 = vld [vmem:[%s2326_s0 + $0x6a0] sm:$0xff] }
 0x268   :  { %724 = vst [vmem:[%s2327_s1 + $0x660] sm:$0xff] %v468_v27  ;;  %725 = vst [vmem:[%s2327_s1 + $0x668] sm:$0xff] %v469_v28  ;;  %v474_v39 = vadd.f32 %v218_v36, %v218_v36  ;;  %v475_v40 = vadd.f32 %v219_v37, %v219_v37  ;;  %v476_v41 = vadd.f32 %v220_v38, %v220_v38 }
 0x269   :  { %726 = vst [vmem:[%s2327_s1 + $0x670] sm:$0xff] %v470_v29 }
 0x270   :  { %v221_v42 = vld [vmem:[%s2326_s0 + $0x6a8] sm:$0xff]  ;;  %v222_v43 = vld [vmem:[%s2326_s0 + $0x6b0] sm:$0xff]  ;;  %v223_v44 = vld [vmem:[%s2326_s0 + $0x6b8] sm:$0xff] }
 0x271   :  { %727 = vst [vmem:[%s2327_s1 + $0x678] sm:$0xff] %v471_v33  ;;  %728 = vst [vmem:[%s2327_s1 + $0x680] sm:$0xff] %v472_v34  ;;  %v477_v45 = vadd.f32 %v221_v42, %v221_v42  ;;  %v478_v46 = vadd.f32 %v222_v43, %v222_v43  ;;  %v479_v47 = vadd.f32 %v223_v44, %v223_v44 }
 0x272   :  { %729 = vst [vmem:[%s2327_s1 + $0x688] sm:$0xff] %v473_v35 }
 0x279   :  { %v224_v48 = vld [vmem:[%s2326_s0 + $0x6c0] sm:$0xff]  ;;  %v225_v49 = vld [vmem:[%s2326_s0 + $0x6c8] sm:$0xff]  ;;  %v226_v50 = vld [vmem:[%s2326_s0 + $0x6d0] sm:$0xff] }
 0x27a   :  { %730 = vst [vmem:[%s2327_s1 + $0x690] sm:$0xff] %v474_v39  ;;  %731 = vst [vmem:[%s2327_s1 + $0x698] sm:$0xff] %v475_v40  ;;  %v480_v51 = vadd.f32 %v224_v48, %v224_v48  ;;  %v481_v52 = vadd.f32 %v225_v49, %v225_v49  ;;  %v482_v53 = vadd.f32 %v226_v50, %v226_v50 }
 0x27b   :  { %732 = vst [vmem:[%s2327_s1 + $0x6a0] sm:$0xff] %v476_v41 }
 0x282   :  { %v227_v54 = vld [vmem:[%s2326_s0 + $0x6d8] sm:$0xff]  ;;  %v228_v55 = vld [vmem:[%s2326_s0 + $0x6e0] sm:$0xff]  ;;  %v229_v56 = vld [vmem:[%s2326_s0 + $0x6e8] sm:$0xff] }
 0x283   :  { %733 = vst [vmem:[%s2327_s1 + $0x6a8] sm:$0xff] %v477_v45  ;;  %734 = vst [vmem:[%s2327_s1 + $0x6b0] sm:$0xff] %v478_v46  ;;  %v483_v57 = vadd.f32 %v227_v54, %v227_v54  ;;  %v484_v58 = vadd.f32 %v228_v55, %v228_v55  ;;  %v485_v59 = vadd.f32 %v229_v56, %v229_v56 }
 0x284   :  { %735 = vst [vmem:[%s2327_s1 + $0x6b8] sm:$0xff] %v479_v47 }
 0x28b   :  { %v230_v60 = vld [vmem:[%s2326_s0 + $0x6f0] sm:$0xff]  ;;  %v231_v61 = vld [vmem:[%s2326_s0 + $0x6f8] sm:$0xff]  ;;  %v232_v62 = vld [vmem:[%s2326_s0 + $0x700] sm:$0xff] }
 0x28c   :  { %736 = vst [vmem:[%s2327_s1 + $0x6c0] sm:$0xff] %v480_v51  ;;  %737 = vst [vmem:[%s2327_s1 + $0x6c8] sm:$0xff] %v481_v52  ;;  %v486_v63 = vadd.f32 %v230_v60, %v230_v60  ;;  %v487_v0 = vadd.f32 %v231_v61, %v231_v61  ;;  %v488_v1 = vadd.f32 %v232_v62, %v232_v62 }
 0x28d   :  { %738 = vst [vmem:[%s2327_s1 + $0x6d0] sm:$0xff] %v482_v53 }
 0x294   :  { %v233_v2 = vld [vmem:[%s2326_s0 + $0x708] sm:$0xff]  ;;  %v234_v3 = vld [vmem:[%s2326_s0 + $0x710] sm:$0xff]  ;;  %v235_v4 = vld [vmem:[%s2326_s0 + $0x718] sm:$0xff] }
 0x295   :  { %739 = vst [vmem:[%s2327_s1 + $0x6d8] sm:$0xff] %v483_v57  ;;  %740 = vst [vmem:[%s2327_s1 + $0x6e0] sm:$0xff] %v484_v58  ;;  %v489_v5 = vadd.f32 %v233_v2, %v233_v2  ;;  %v490_v6 = vadd.f32 %v234_v3, %v234_v3  ;;  %v491_v7 = vadd.f32 %v235_v4, %v235_v4 }
 0x296   :  { %741 = vst [vmem:[%s2327_s1 + $0x6e8] sm:$0xff] %v485_v59 }
 0x29d   :  { %v236_v8 = vld [vmem:[%s2326_s0 + $0x720] sm:$0xff]  ;;  %v237_v9 = vld [vmem:[%s2326_s0 + $0x728] sm:$0xff]  ;;  %v238_v10 = vld [vmem:[%s2326_s0 + $0x730] sm:$0xff] }
 0x29e   :  { %742 = vst [vmem:[%s2327_s1 + $0x6f0] sm:$0xff] %v486_v63  ;;  %743 = vst [vmem:[%s2327_s1 + $0x6f8] sm:$0xff] %v487_v0  ;;  %v492_v11 = vadd.f32 %v236_v8, %v236_v8  ;;  %v493_v12 = vadd.f32 %v237_v9, %v237_v9  ;;  %v494_v13 = vadd.f32 %v238_v10, %v238_v10 }
 0x29f   :  { %744 = vst [vmem:[%s2327_s1 + $0x700] sm:$0xff] %v488_v1 }
 0x2a6   :  { %v239_v14 = vld [vmem:[%s2326_s0 + $0x738] sm:$0xff]  ;;  %v240_v15 = vld [vmem:[%s2326_s0 + $0x740] sm:$0xff]  ;;  %v241_v16 = vld [vmem:[%s2326_s0 + $0x748] sm:$0xff] }
 0x2a7   :  { %745 = vst [vmem:[%s2327_s1 + $0x708] sm:$0xff] %v489_v5  ;;  %746 = vst [vmem:[%s2327_s1 + $0x710] sm:$0xff] %v490_v6  ;;  %v495_v17 = vadd.f32 %v239_v14, %v239_v14  ;;  %v496_v18 = vadd.f32 %v240_v15, %v240_v15  ;;  %v497_v19 = vadd.f32 %v241_v16, %v241_v16 }
 0x2a8   :  { %747 = vst [vmem:[%s2327_s1 + $0x718] sm:$0xff] %v491_v7 }
 0x2af   :  { %v242_v20 = vld [vmem:[%s2326_s0 + $0x750] sm:$0xff]  ;;  %v243_v21 = vld [vmem:[%s2326_s0 + $0x758] sm:$0xff]  ;;  %v244_v22 = vld [vmem:[%s2326_s0 + $0x760] sm:$0xff] }
 0x2b0   :  { %748 = vst [vmem:[%s2327_s1 + $0x720] sm:$0xff] %v492_v11  ;;  %749 = vst [vmem:[%s2327_s1 + $0x728] sm:$0xff] %v493_v12  ;;  %v498_v23 = vadd.f32 %v242_v20, %v242_v20  ;;  %v499_v24 = vadd.f32 %v243_v21, %v243_v21  ;;  %v500_v25 = vadd.f32 %v244_v22, %v244_v22 }
 0x2b1   :  { %750 = vst [vmem:[%s2327_s1 + $0x730] sm:$0xff] %v494_v13 }
 0x2b8   :  { %v245_v26 = vld [vmem:[%s2326_s0 + $0x768] sm:$0xff]  ;;  %v246_v27 = vld [vmem:[%s2326_s0 + $0x770] sm:$0xff]  ;;  %v247_v28 = vld [vmem:[%s2326_s0 + $0x778] sm:$0xff] }
 0x2b9   :  { %751 = vst [vmem:[%s2327_s1 + $0x738] sm:$0xff] %v495_v17  ;;  %752 = vst [vmem:[%s2327_s1 + $0x740] sm:$0xff] %v496_v18  ;;  %v501_v29 = vadd.f32 %v245_v26, %v245_v26  ;;  %v502_v30 = vadd.f32 %v246_v27, %v246_v27  ;;  %v503_v31 = vadd.f32 %v247_v28, %v247_v28 }
 0x2ba   :  { %753 = vst [vmem:[%s2327_s1 + $0x748] sm:$0xff] %v497_v19 }
 0x2c1   :  { %v248_v32 = vld [vmem:[%s2326_s0 + $0x780] sm:$0xff]  ;;  %v249_v33 = vld [vmem:[%s2326_s0 + $0x788] sm:$0xff]  ;;  %v250_v34 = vld [vmem:[%s2326_s0 + $0x790] sm:$0xff] }
 0x2c2   :  { %754 = vst [vmem:[%s2327_s1 + $0x750] sm:$0xff] %v498_v23  ;;  %755 = vst [vmem:[%s2327_s1 + $0x758] sm:$0xff] %v499_v24  ;;  %v504_v35 = vadd.f32 %v248_v32, %v248_v32  ;;  %v505_v36 = vadd.f32 %v249_v33, %v249_v33  ;;  %v506_v37 = vadd.f32 %v250_v34, %v250_v34 }
 0x2c3   :  { %756 = vst [vmem:[%s2327_s1 + $0x760] sm:$0xff] %v500_v25 }
 0x2ca   :  { %v251_v38 = vld [vmem:[%s2326_s0 + $0x798] sm:$0xff]  ;;  %v252_v39 = vld [vmem:[%s2326_s0 + $0x7a0] sm:$0xff]  ;;  %v253_v40 = vld [vmem:[%s2326_s0 + $0x7a8] sm:$0xff] }
 0x2cb   :  { %757 = vst [vmem:[%s2327_s1 + $0x768] sm:$0xff] %v501_v29  ;;  %758 = vst [vmem:[%s2327_s1 + $0x770] sm:$0xff] %v502_v30  ;;  %v507_v41 = vadd.f32 %v251_v38, %v251_v38  ;;  %v508_v42 = vadd.f32 %v252_v39, %v252_v39  ;;  %v509_v43 = vadd.f32 %v253_v40, %v253_v40 }
 0x2cc   :  { %759 = vst [vmem:[%s2327_s1 + $0x778] sm:$0xff] %v503_v31 }
 0x2d3   :  { %v254_v44 = vld [vmem:[%s2326_s0 + $0x7b0] sm:$0xff]  ;;  %v255_v45 = vld [vmem:[%s2326_s0 + $0x7b8] sm:$0xff]  ;;  %v256_v46 = vld [vmem:[%s2326_s0 + $0x7c0] sm:$0xff] }
 0x2d4   :  { %760 = vst [vmem:[%s2327_s1 + $0x780] sm:$0xff] %v504_v35  ;;  %761 = vst [vmem:[%s2327_s1 + $0x788] sm:$0xff] %v505_v36  ;;  %v510_v47 = vadd.f32 %v254_v44, %v254_v44  ;;  %v511_v48 = vadd.f32 %v255_v45, %v255_v45  ;;  %v512_v49 = vadd.f32 %v256_v46, %v256_v46 }
 0x2d5   :  { %762 = vst [vmem:[%s2327_s1 + $0x790] sm:$0xff] %v506_v37 }
 0x2dc   :  { %v257_v50 = vld [vmem:[%s2326_s0 + $0x7c8] sm:$0xff]  ;;  %v258_v51 = vld [vmem:[%s2326_s0 + $0x7d0] sm:$0xff]  ;;  %v259_v52 = vld [vmem:[%s2326_s0 + $0x7d8] sm:$0xff] }
 0x2dd   :  { %763 = vst [vmem:[%s2327_s1 + $0x798] sm:$0xff] %v507_v41  ;;  %764 = vst [vmem:[%s2327_s1 + $0x7a0] sm:$0xff] %v508_v42  ;;  %v513_v53 = vadd.f32 %v257_v50, %v257_v50  ;;  %v514_v54 = vadd.f32 %v258_v51, %v258_v51  ;;  %v515_v55 = vadd.f32 %v259_v52, %v259_v52 }
 0x2de   :  { %765 = vst [vmem:[%s2327_s1 + $0x7a8] sm:$0xff] %v509_v43 }
 0x2e5   :  { %v260_v56 = vld [vmem:[%s2326_s0 + $0x7e0] sm:$0xff]  ;;  %v261_v57 = vld [vmem:[%s2326_s0 + $0x7e8] sm:$0xff]  ;;  %v262_v58 = vld [vmem:[%s2326_s0 + $0x7f0] sm:$0xff] }
 0x2e6   :  { %766 = vst [vmem:[%s2327_s1 + $0x7b0] sm:$0xff] %v510_v47  ;;  %767 = vst [vmem:[%s2327_s1 + $0x7b8] sm:$0xff] %v511_v48  ;;  %v516_v59 = vadd.f32 %v260_v56, %v260_v56  ;;  %v517_v60 = vadd.f32 %v261_v57, %v261_v57  ;;  %v518_v61 = vadd.f32 %v262_v58, %v262_v58 }
 0x2e7   :  { %768 = vst [vmem:[%s2327_s1 + $0x7c0] sm:$0xff] %v512_v49 }
 0x2ee   :  { %v263_v62 = vld [vmem:[%s2326_s0 + $0x7f8] sm:$0xff] }
 0x2ef   :  { %769 = vst [vmem:[%s2327_s1 + $0x7c8] sm:$0xff] %v513_v53  ;;  %770 = vst [vmem:[%s2327_s1 + $0x7d0] sm:$0xff] %v514_v54  ;;  %v519_v63 = vadd.f32 %v263_v62, %v263_v62 }
 0x2f0   :  { %771 = vst [vmem:[%s2327_s1 + $0x7d8] sm:$0xff] %v515_v55  ;;  %772 = vst [vmem:[%s2327_s1 + $0x7e0] sm:$0xff] %v516_v59 }
 0x2f1   :  { %773 = vst [vmem:[%s2327_s1 + $0x7e8] sm:$0xff] %v517_v60  ;;  %774 = vst [vmem:[%s2327_s1 + $0x7f0] sm:$0xff] %v518_v61 }
 0x2f2   :  { %775 = vst [vmem:[%s2327_s1 + $0x7f8] sm:$0xff] %v519_v63 }

</bundles_post_ra>
